<compile_context>
chip_gen: v7x
topology: tpu7x:2x2x1
jax: 0.10.0
libtpu: 0.0.40
codegen_flags: <defaults>
</compile_context>

<pallas_src>
import functools
import math

import jax
import jax.numpy as jnp
import numpy as np
from jax import lax
from jax.experimental import pallas as pl
from jax.experimental.pallas import tpu as pltpu

HIDDEN = 64           # TwoBranchNet hidden_dim (hard-coded to 64 in ConvBlock.__init__)
HALF = HIDDEN // 2    # sinusoidal embedding half-dim


def _relu(x):
    return jnp.maximum(x, 0.0)


def _round_up(n, m):
    return ((n + m - 1) // m) * m


def _build_tap_masks(H, W, B):
    """(9, B*H*W) {0,1} masks: row tap=(dy+1)*3+(dx+1) is 1 where (y+dy, x+dx) is in-bounds."""
    m = np.zeros((9, H, W), np.float32)
    for dy in (-1, 0, 1):
        for dx in (-1, 0, 1):
            tap = (dy + 1) * 3 + (dx + 1)
            ys = slice(max(0, -dy), min(H, H - dy))
            xs = slice(max(0, -dx), min(W, W - dx))
            m[tap][ys, xs] = 1.0
    return jnp.asarray(np.tile(m.reshape(9, H * W), (1, B)))


def _build_batch_selector(B, HW):
    """(B, B*HW) 0/1 matrix; sel[b, b*HW:(b+1)*HW]=1. Broadcasts per-batch scalars over lanes."""
    sel = np.zeros((B, B * HW), np.float32)
    for b in range(B):
        sel[b, b * HW:(b + 1) * HW] = 1.0
    return jnp.asarray(sel)


# One-time probe of pltpu.roll's sign convention so the im2col stays correct
# across Mosaic versions (we need piece[i] = img[(i + shift) % L]).
def _roll_probe_kernel(x_ref, o_ref):
    o_ref[...] = pltpu.roll(x_ref[...], 1, axis=1)


@functools.lru_cache(maxsize=None)
def _pltpu_roll_matches_np() -> bool:
    x = jnp.tile(jnp.arange(128, dtype=jnp.float32)[None, :], (8, 1))
    y = pl.pallas_call(_roll_probe_kernel,
                       out_shape=jax.ShapeDtypeStruct((8, 128), jnp.float32))(x)
    return float(np.asarray(jax.block_until_ready(y))[0, 0]) == 127.0   # np.roll puts 127 first


# ---------------------------------------------------------------------------
# Fused kernel: TwoBranchNet + conv3x3 + emb-add + ReLU + conv3x3 + ReLU + res.
# Gridless: every operand is a whole-array VMEM ref; the batch rides on lanes.
# ---------------------------------------------------------------------------
def _make_kernel(B, H, W, Cout, use_res_conv, np_roll):
    HW = H * W
    L = B * HW                              # total lane extent (batches concatenated)

    def _im2col(img, masks):
        # img: (C, L) with spatial-within-batch on lanes.  Returns (9*C, L),
        # rows tap-major / channel-inner, matching reshaped HWIO weights.
        pieces = []
        for dy in (-1, 0, 1):
            for dx in (-1, 0, 1):
                tap = (dy + 1) * 3 + (dx + 1)
                shift = dy * W + dx
                if shift == 0:
                    piece = img
                else:
                    amt = (-shift) % L if np_roll else shift % L
                    piece = pltpu.roll(img, amt, axis=1)        # XLU lane rotate
                    piece = piece * masks[tap:tap + 1, :]       # zero out-of-image taps
                pieces.append(piece)
        return jnp.concatenate(pieces, axis=0)                  # sublane-aligned concat

    def kernel(x_ref, masks_ref, sel_ref, scT_ref, cT_ref,
               waT_ref, baT_ref, wbT_ref, bbT_ref, wcT_ref, bcT_ref,
               wmscT_ref, wmhT_ref, bmT_ref,
               w1_ref, b1_ref, w2_ref, b2_ref, *rest):
        if use_res_conv:
            wr_ref, br_ref, out_ref = rest
        else:
            (out_ref,) = rest
        dot = functools.partial(jnp.dot, preferred_element_type=jnp.float32)

        # ---- TwoBranchNet (transposed: features on sublanes, batch on lanes) ----
        h = _relu(waT_ref[...] * cT_ref[...] + baT_ref[...])             # (HID, B)
        h = _relu(dot(wbT_ref[...], h) + bbT_ref[...])                   # (HID, B)
        h = dot(wcT_ref[...], h) + bcT_ref[...]                          # (HID, B)
        embT = _relu(dot(wmscT_ref[...], scT_ref[...])                   # sin/cos branch
                     + dot(wmhT_ref[...], h) + bmT_ref[...])             # (Cout, B)
        # broadcast each (channel, batch) scalar across that batch's HW lanes
        emb_map = dot(embT, sel_ref[...])                                # (Cout, L)

        # ---- fused conv block: one im2col matmul per conv over ALL batches ----
        masks = masks_ref[...]                                           # (9, L)
        xcat = jnp.concatenate([x_ref[b] for b in range(B)], axis=1)     # (Cinp, L), 256-aligned

        p1 = _im2col(xcat, masks)                                        # (9*Cinp, L)
        h1 = _relu(dot(w1_ref[...], p1) + b1_ref[...] + emb_map)         # (Cout, L)

        p2 = _im2col(h1, masks)                                          # (9*Cout, L)
        h2 = _relu(dot(w2_ref[...], p2) + b2_ref[...])                   # (Cout, L)

        if use_res_conv:
            res = dot(wr_ref[...], xcat) + br_ref[...]                   # 1x1 residual conv
        else:
            res = xcat[:Cout, :]                                         # identity residual
        out = h2 + res                                                   # (Cout, L)

        for b in range(B):                                               # lane-dense stores
            out_ref[b] = out[:, b * HW:(b + 1) * HW]

    return kernel


# ---------------------------------------------------------------------------
# Wrapper: NCHW in / NCHW out, no transposes, no spatial padding.
# ---------------------------------------------------------------------------
def conv_block_forward(x_nchw, t, cond, p):
    B, Cin, H, W = x_nchw.shape
    HW = H * W
    Cout = p['w1'].shape[-1]                # best perf when Cout is a multiple of 8
    Cinp = _round_up(Cin, 8)                # keep im2col sublane blocks tile-aligned
    use_res_conv = (Cin != Cout)
    f32 = jnp.float32

    x = x_nchw.reshape(B, Cin, HW).astype(f32)          # free reshape: spatial -> lanes
    if Cinp != Cin:                                     # tiny channel pad (zeros)
        x = jnp.concatenate([x, jnp.zeros((B, Cinp - Cin, HW), f32)], axis=1)

    # conv weights in matmul form: (Cout, 9*C), columns ordered (tap, channel)
    w1 = p['w1'].astype(f32)
    if Cinp != Cin:
        w1 = jnp.concatenate([w1, jnp.zeros((3, 3, Cinp - Cin, Cout), f32)], axis=2)
    w1m = w1.reshape(9 * Cinp, Cout).T
    w2m = p['w2'].astype(f32).reshape(9 * Cout, Cout).T

    # sinusoidal time features: 2*B*HALF floats, computed once in the wrapper
    arg = t.astype(f32) * p['freq']                                     # (B, HALF)
    scT = jnp.concatenate([jnp.sin(arg), jnp.cos(arg)], axis=-1).T      # (2*HALF, B)

    operands = [
        x,
        _build_tap_masks(H, W, B),           # (9, B*HW)
        _build_batch_selector(B, HW),        # (B, B*HW)
        scT, cond.astype(f32).T,
        p['wa'].T, p['ba'].T, p['wb'].T, p['bb'].T, p['wc'].T, p['bc'].T,
        p['wm'][:HIDDEN].T, p['wm'][HIDDEN:].T, p['bm'].T,
        w1m, p['b1'].T, w2m, p['b2'].T,
    ]
    if use_res_conv:
        wr = p['wr'].astype(f32)
        if Cinp != Cin:
            wr = jnp.concatenate([wr, jnp.zeros((Cinp - Cin, Cout), f32)], axis=0)
        operands += [wr.T, p['br'].T]

    kernel = _make_kernel(B, H, W, Cout, use_res_conv, _pltpu_roll_matches_np())
    out = pl.pallas_call(                              # single fused, gridless invocation
        kernel,
        out_shape=jax.ShapeDtypeStruct((B, Cout, HW), f32),
    )(*operands)

    return out.reshape(B, Cout, H, W)                  # free reshape back to NCHW


# ---------------------------------------------------------------------------
# Deterministic parameter init (synthetic; shapes follow the PyTorch module)
# ---------------------------------------------------------------------------
def init_params(key, in_channels, out_channels):
    ks = jax.random.split(key, 14)

    def w(k, shape, scale=0.1):
        return scale * jax.random.normal(k, shape, dtype=jnp.float32)

    p = {
        'w1': w(ks[0], (3, 3, in_channels, out_channels)),
        'b1': w(ks[1], (1, out_channels), 0.05),
        'w2': w(ks[2], (3, 3, out_channels, out_channels)),
        'b2': w(ks[3], (1, out_channels), 0.05),
        'wa': w(ks[6], (1, HIDDEN)), 'ba': w(ks[7], (1, HIDDEN), 0.05),
        'wb': w(ks[8], (HIDDEN, HIDDEN)), 'bb': w(ks[9], (1, HIDDEN), 0.05),
        'wc': w(ks[10], (HIDDEN, HIDDEN)), 'bc': w(ks[11], (1, HIDDEN), 0.05),
        'wm': w(ks[12], (2 * HIDDEN, out_channels)),
        'bm': w(ks[13], (1, out_channels), 0.05),
    }
    if in_channels != out_channels:
        p['wr'] = w(ks[4], (in_channels, out_channels))
        p['br'] = w(ks[5], (1, out_channels), 0.05)
    else:  # nn.Identity() expressed as an identity 1x1 conv (reference only)
        p['wr'] = jnp.eye(in_channels, dtype=jnp.float32)
        p['br'] = jnp.zeros((1, out_channels), jnp.float32)

    emb_scale = math.log(10000.0) / (HALF - 1)
    p['freq'] = jnp.exp(jnp.arange(HALF, dtype=jnp.float32) * -emb_scale).reshape(1, HALF)
    return p


# ---------------------------------------------------------------------------
# Pure-JAX reference (mirrors the PyTorch forward) for correctness checking
# ---------------------------------------------------------------------------
def reference_forward(x_nchw, t, cond, p):
    arg = t * p['freq']
    out1 = jnp.concatenate([jnp.sin(arg), jnp.cos(arg)], axis=-1)
    h = _relu(cond @ p['wa'] + p['ba'])
    h = _relu(h @ p['wb'] + p['bb'])
    h = h @ p['wc'] + p['bc']
    emb = _relu(jnp.concatenate([out1, h], axis=-1) @ p['wm'] + p['bm'])

    x = jnp.transpose(x_nchw, (0, 2, 3, 1))
    dn = ('NHWC', 'HWIO', 'NHWC')
    hp = lax.Precision.HIGHEST
    h1 = lax.conv_general_dilated(x, p['w1'], (1, 1), 'SAME',
                                  dimension_numbers=dn, precision=hp) + p['b1'][0]
    h1 = _relu(h1 + emb[:, None, None, :])
    h2 = lax.conv_general_dilated(h1, p['w2'], (1, 1), 'SAME',
                                  dimension_numbers=dn, precision=hp) + p['b2'][0]
    res = x @ p['wr'] + p['br'][0]
    out = _relu(h2) + res
    return jnp.transpose(out, (0, 3, 1, 2))


if __name__ == "__main__":
    key = jax.random.PRNGKey(0)
    B, Cin, Cout, H, W = 2, 4, 8, 16, 16
    kx, kt, kc, kp = jax.random.split(key, 4)

    x = jax.random.normal(kx, (B, Cin, H, W), dtype=jnp.float32)      # NCHW, like PyTorch
    t = jax.random.uniform(kt, (B, 1), dtype=jnp.float32, minval=0.0, maxval=100.0)
    cond = jax.random.normal(kc, (B, 1), dtype=jnp.float32)
    params = init_params(kp, Cin, Cout)

    out = conv_block_forward(x, t, cond, params)
    out = jax.block_until_ready(out)

    ref = reference_forward(x, t, cond, params)
    np.testing.assert_allclose(np.asarray(out), np.asarray(ref), rtol=3e-3, atol=3e-3)
    print("KERNEL_OK")
</pallas_src>

<mosaic_0001>
module attributes {stable_mosaic.version = 11 : i64} {
  func.func @_roll_probe_kernel(%arg0: memref<8x128xf32, #tpu.memory_space<vmem>>, %arg1: memref<8x128xf32, #tpu.memory_space<vmem>>) attributes {dimension_semantics = [], scalar_prefetch = 0 : i64, scratch_operands = 0 : i64, tpu.core_type = #tpu.core_type<tc>} {
    %c0 = arith.constant 0 : index
    %c0_0 = arith.constant 0 : index
    %0 = vector.load %arg0[%c0, %c0_0] : memref<8x128xf32, #tpu.memory_space<vmem>>, vector<8x128xf32>
    %c1_i32 = arith.constant 1 : i32
    %1 = tpu.dynamic_rotate %0 by %c1_i32 dim 1 : vector<8x128xf32>, i32 -> vector<8x128xf32>
    %c0_1 = arith.constant 0 : index
    %c0_2 = arith.constant 0 : index
    %2 = vector.load %arg1[%c0_1, %c0_2] : memref<8x128xf32, #tpu.memory_space<vmem>>, vector<8x128xf32>
    tpu.vector_store %arg1[%c0_1, %c0_2], %1 {strides = array<i32>} : memref<8x128xf32, #tpu.memory_space<vmem>>, vector<8x128xf32>,
    return
  }
}

</mosaic_0001>

<bundles_post_ra>
// kernel: tpu_custom_call.1
= control target key start
LH: loop header
LB: loop body
LE: loop exit
PB: predicated region body
PF: predicated region fallthrough
CT: control target
= control target key end

     0   :  { %6 = vsyncpa [#allocation3], 0  ;;  %s128_s0 = inlined_call_operand.hbm [shape: f32[8,128], index: 0, kind: input, shape index: {}]   ;;  %s129_s1 = inlined_call_operand.hbm [shape: f32[8,128], index: 1, kind: output, shape index: {}]  }
   0x1   :  { %7 = vsyncpa [#allocation4], 0  ;;  %s91_s6 = smov [#allocation2]   ;;  %s43_s10 = scalar_lea.hbm %s128_s0, 128 }
   0x2   :  { %s14_s7 = sshll.u32 %s91_s6, 4  ;;  %p44_p0 = scmp.ne.s32.totalorder %s128_s0, %s43_s10  ;;  %s15_s7 = int_to_ptr.vmem [resolvable:$true] %s14_s7 }
   0x3   :  { %p47_p1 = scmp.lt.u32.totalorder %s43_s10, %s128_s0 }
   0x5   :  { %p49_p2 = pnand %p47_p1, %p44_p0 }
   0x7   :  { %52 = shalt.err (!%p49_p2)
}
   0x8   :  { %s53_s15 = scalar_lea.vmem %s15_s7, 128  ;;  %p58_p4 = scmp.lt.s32.totalorder %s15_s7, %s15_s7 }
   0x9   :  { %p54_p3 = scmp.ne.s32.totalorder %s15_s7, %s53_s15  ;;  %p59_p5 = scmp.lt.s32.totalorder %s53_s15, %s53_s15 }
   0xb   :  { %p60_p6 = por %p59_p5, %p58_p4 }
   0xd   :  { %p61_p7 = pnand %p60_p6, %p54_p3 }
   0xf   :  { %64 = shalt.err (!%p61_p7)
}
  0x10   :  { %17 = dma.hbm_to_vmem [thread:$0]  %s128_s0, 128, %s15_s7, [#allocation3]  }
  0x11   :  { %87 = dma.done.wait [#allocation3], 128  }
  0x12   :  { %88 = vsyncadd [#allocation3], 4294967168  ;;  %v21_v0 = vld [vmem:[#allocation2] sm:$0xff]  ;;  %s92_s18 = smov 1   ;;  %s93_s19 = smov [#allocation5]  }
  0x13   :  { %22 = vrot.lane.b32.xlu0 %v21_v0, %s92_s18  ;;  %s31_s20 = sshll.u32 %s93_s19, 4  ;;  %s32_s20 = int_to_ptr.vmem [resolvable:$true] %s31_s20 }
  0x14   :  { %s65_s21 = scalar_lea.vmem %s32_s20, 128  ;;  %p70_p9 = scmp.lt.s32.totalorder %s32_s20, %s32_s20 }
  0x15   :  { %p66_p8 = scmp.ne.s32.totalorder %s32_s20, %s65_s21  ;;  %p71_p10 = scmp.lt.s32.totalorder %s65_s21, %s65_s21 }
  0x17   :  { %p72_p11 = por %p71_p10, %p70_p9 }
  0x19   :  { %p73_p12 = pnand %p72_p11, %p66_p8 }
  0x85   :  { %v23_v1 = vpop.permute.xlu0 %22 }
  0x86   :  { %24 = vst [vmem:[#allocation5] sm:$0xff] %v23_v1 }
  0x87   :  { %76 = shalt.err (!%p73_p12)
}
  0x88   :  { %s77_s0 = scalar_lea.hbm %s129_s1, 128 }
  0x89   :  { %p78_p13 = scmp.ne.s32.totalorder %s129_s1, %s77_s0  ;;  %p81_p0 = scmp.lt.u32.totalorder %s77_s0, %s129_s1 }
  0x8b   :  { %p83_p1 = pnand %p81_p0, %p78_p13 }
  0x8d   :  { %86 = shalt.err (!%p83_p1)
}
  0x8e   :  { %34 = dma.vmem_to_hbm [thread:$0]  %s32_s20, 128, %s129_s1, [#allocation4]  }
  0x8f   :  { %89 = dma.done.wait [#allocation4], 128  }
  0x90   :  { %90 = vsyncadd [#allocation4], 4294967168 }
  0x91   :  { %38 = vsyncpa [#allocation3], 1 }
  0x92   :  { %39 = vsyncpa [#allocation4], 1 }

</bundles_post_ra>
